<compile_context>
chip_gen: v6e
topology: v6e:2x2x1
jax: 0.10.0
libtpu: 0.0.40
codegen_flags: <defaults>
</compile_context>

<pallas_src>
import functools

import jax
import jax.numpy as jnp
from jax.experimental import pallas as pl
from jax.experimental.pallas import tpu as pltpu


def _round_up(x, m):
    return ((x + m - 1) // m) * m


def _linear_kernel(x_ref, w_ref, b_ref, o_ref):
    # x_ref: (TB, D), w_ref: (D, A_pad), b_ref: (1, A_pad), o_ref: (TB, A_pad)
    # Plain NN matmul — MXU-native, no in-kernel transpose.
    acc = jnp.dot(x_ref[...], w_ref[...], preferred_element_type=jnp.float32)
    o_ref[...] = (acc + b_ref[...]).astype(o_ref.dtype)


def prepare_params(weight, bias):
    """One-time parameter prep (outside the per-step jitted path).

    Args:
      weight: (num_actions, D) float32  -- PyTorch nn.Linear convention (A, D)
      bias:   (num_actions,)   float32

    Returns:
      w_t: (D, A_pad) float32  -- padded to lane-dense A_pad=128, transposed
      b_p: (1, A_pad) float32
    """
    a, _ = weight.shape
    a_pad = _round_up(max(a, 128), 128)
    w_t = jnp.pad(weight, ((0, a_pad - a), (0, 0))).T          # (D, A_pad)
    b_p = jnp.pad(bias, (0, a_pad - a)).reshape(1, a_pad)      # (1, A_pad)
    return jnp.asarray(w_t), jnp.asarray(b_p)


@functools.partial(jax.jit, static_argnames=("num_actions", "block_b"))
def linear_qnet_forward(state, w_t, b_p, *, num_actions, block_b=512):
    """Compute Q-values.

    Args:
      state: (batch, H, W, C*history) float32
      w_t:   (D, A_pad) float32  from prepare_params
      b_p:   (1, A_pad) float32  from prepare_params
      num_actions: real number of actions (columns kept from the padded block)
      block_b: max batch-tile rows (multiple of 8 for f32 sublanes).

    Returns:
      q_values: (batch, num_actions) float32
    """
    batch = state.shape[0]
    x = state.reshape(batch, -1)                      # (B, D) — contiguous, no copy
    d, a_pad = w_t.shape

    # Batch tile: multiple of 8, capped by block_b.  No wrapper-side padding —
    # Pallas handles the uneven final block (masked edge stores only).
    tb = min(block_b, _round_up(batch, 8))
    grid = (pl.cdiv(batch, tb),)

    out = pl.pallas_call(
        _linear_kernel,
        out_shape=jax.ShapeDtypeStruct((batch, a_pad), jnp.float32),
        grid=grid,
        in_specs=[
            pl.BlockSpec((tb, d), lambda i: (i, 0)),      # stream batch tiles
            pl.BlockSpec((d, a_pad), lambda i: (0, 0)),   # weight resident
            pl.BlockSpec((1, a_pad), lambda i: (0, 0)),   # bias resident
        ],
        out_specs=pl.BlockSpec((tb, a_pad), lambda i: (i, 0)),
        compiler_params=pltpu.CompilerParams(
            # Batch tiles are independent: shard across TCs on v7x.
            dimension_semantics=("parallel",),
        ),
        cost_estimate=pl.CostEstimate(
            flops=2 * batch * d * a_pad,
            bytes_accessed=4 * (batch * d + d * a_pad + batch * a_pad),
            transcendentals=0,
        ),
    )(x, w_t, b_p)

    # Drop action-column padding only (no batch padding to drop).
    # TODO(synk): if the consumer can use the (batch, 128) padded block, skip
    # this slice to save one small output HBM pass.
    return out[:, :num_actions]


def init_params(key, in_features, out_features):
    """Deterministic params matching the PyTorch init semantics.

    weight: xavier_uniform_ with gain=0.001 -> U(-b, b),
            b = gain * sqrt(6 / (fan_in + fan_out))
    bias:   PyTorch nn.Linear default -> U(-1/sqrt(fan_in), 1/sqrt(fan_in))
    """
    kw, kb = jax.random.split(key)
    gain = 0.001
    bound_w = gain * (6.0 / (in_features + out_features)) ** 0.5
    weight = jax.random.uniform(
        kw, (out_features, in_features), jnp.float32,
        minval=-bound_w, maxval=bound_w)
    bound_b = 1.0 / (in_features ** 0.5)
    bias = jax.random.uniform(
        kb, (out_features,), jnp.float32, minval=-bound_b, maxval=bound_b)
    return weight, bias


if __name__ == "__main__":
    # Small shapes consistent with the module:
    # observation (H, W, C) = (16, 16, 4), state_history = 1, num_actions = 5
    batch, H, W, C, history = 2, 16, 16, 4, 1
    num_actions = 5
    D = H * W * C * history

    key = jax.random.PRNGKey(0)
    k_state, k_params = jax.random.split(key)

    state = jax.random.normal(k_state, (batch, H, W, C * history), jnp.float32)
    weight, bias = init_params(k_params, D, num_actions)

    # One-time parameter prep (pad + transpose) — hoisted out of the forward.
    w_t, b_p = prepare_params(weight, bias)
    w_t, b_p = jax.block_until_ready((w_t, b_p))

    q_values = linear_qnet_forward(state, w_t, b_p, num_actions=num_actions)
    q_values = jax.block_until_ready(q_values)

    # sanity check against plain-JAX reference (same math as the PyTorch module)
    ref = state.reshape(batch, -1) @ weight.T + bias
    assert q_values.shape == (batch, num_actions)
    assert jnp.allclose(q_values, ref, atol=1e-5, rtol=1e-5)

    # larger, non-multiple-of-tile batch: exercises the uneven-edge grid path
    big_batch = 300
    k2 = jax.random.PRNGKey(1)
    big_state = jax.random.normal(k2, (big_batch, H, W, C * history), jnp.float32)
    big_q = jax.block_until_ready(
        linear_qnet_forward(big_state, w_t, b_p, num_actions=num_actions))
    big_ref = big_state.reshape(big_batch, -1) @ weight.T + bias
    assert big_q.shape == (big_batch, num_actions)
    assert jnp.allclose(big_q, big_ref, atol=1e-4, rtol=1e-4)

    # even larger batch: multiple full tiles + partial edge, >=2 tiles for v7x
    huge_batch = 1111
    k3 = jax.random.PRNGKey(2)
    huge_state = jax.random.normal(k3, (huge_batch, H, W, C * history), jnp.float32)
    huge_q = jax.block_until_ready(
        linear_qnet_forward(huge_state, w_t, b_p, num_actions=num_actions))
    huge_ref = huge_state.reshape(huge_batch, -1) @ weight.T + bias
    assert huge_q.shape == (huge_batch, num_actions)
    assert jnp.allclose(huge_q, huge_ref, atol=1e-4, rtol=1e-4)

    print("KERNEL_OK")
</pallas_src>

<mosaic_0001>
module attributes {stable_mosaic.version = 11 : i64} {
  func.func @_linear_kernel(%arg0: i32, %arg1: memref<8x1024xf32, #tpu.memory_space<vmem>>, %arg2: memref<1024x128xf32, #tpu.memory_space<vmem>>, %arg3: memref<1x128xf32, #tpu.memory_space<vmem>>, %arg4: memref<8x128xf32, #tpu.memory_space<vmem>>) attributes {dimension_semantics = [#tpu.dimension_semantics<parallel>], iteration_bounds = array<i64: 1>, scalar_prefetch = 0 : i64, scratch_operands = 0 : i64, tpu.core_type = #tpu.core_type<tc>, window_params = [{transform_indices = @transform_0, window_bounds = array<i64: 8, 1024>}, {pipeline_mode = #tpu.pipeline_mode<synchronous>, transform_indices = @transform_1, window_bounds = array<i64: 1024, 128>}, {pipeline_mode = #tpu.pipeline_mode<synchronous>, transform_indices = @transform_2, window_bounds = array<i64: 1, 128>}, {transform_indices = @transform_3, window_bounds = array<i64: 8, 128>}]} {
    %c0 = arith.constant 0 : index
    %c0_0 = arith.constant 0 : index
    %0 = vector.load %arg1[%c0, %c0_0] : memref<8x1024xf32, #tpu.memory_space<vmem>>, vector<8x1024xf32>
    %c0_1 = arith.constant 0 : index
    %c0_2 = arith.constant 0 : index
    %1 = vector.load %arg2[%c0_1, %c0_2] : memref<1024x128xf32, #tpu.memory_space<vmem>>, vector<1024x128xf32>
    %cst = arith.constant dense<0.000000e+00> : vector<8x128xf32>
    %2 = tpu.matmul %0, %1, %cst {dimension_numbers = #tpu.dot_dimension_numbers<[1], [0], [0], [1], [0, 0, 1, 1], [], []>} : vector<8x1024xf32>, vector<1024x128xf32>, vector<8x128xf32> -> vector<8x128xf32>
    %c0_3 = arith.constant 0 : index
    %c0_4 = arith.constant 0 : index
    %3 = vector.load %arg3[%c0_3, %c0_4] : memref<1x128xf32, #tpu.memory_space<vmem>>, vector<1x128xf32>
    %4 = vector.broadcast %3 : vector<1x128xf32> to vector<8x128xf32>
    %5 = arith.addf %2, %4 : vector<8x128xf32>
    %c0_5 = arith.constant 0 : index
    %c0_6 = arith.constant 0 : index
    %6 = vector.load %arg4[%c0_5, %c0_6] : memref<8x128xf32, #tpu.memory_space<vmem>>, vector<8x128xf32>
    tpu.vector_store %arg4[%c0_5, %c0_6], %5 {strides = array<i32>} : memref<8x128xf32, #tpu.memory_space<vmem>>, vector<8x128xf32>,
    return
  }
  func.func @transform_0(%arg0: i32) -> (i32, i32) {
    %c0_i32 = arith.constant 0 : i32
    %c0_i32_0 = arith.constant 0 : i32
    return %arg0, %c0_i32 : i32, i32
  }
  func.func @transform_1(%arg0: i32) -> (i32, i32) {
    %c0_i32 = arith.constant 0 : i32
    %c0_i32_0 = arith.constant 0 : i32
    %c0_i32_1 = arith.constant 0 : i32
    return %c0_i32, %c0_i32_0 : i32, i32
  }
  func.func @transform_2(%arg0: i32) -> (i32, i32) {
    %c0_i32 = arith.constant 0 : i32
    %c0_i32_0 = arith.constant 0 : i32
    %c0_i32_1 = arith.constant 0 : i32
    return %c0_i32, %c0_i32_0 : i32, i32
  }
  func.func @transform_3(%arg0: i32) -> (i32, i32) {
    %c0_i32 = arith.constant 0 : i32
    %c0_i32_0 = arith.constant 0 : i32
    return %arg0, %c0_i32 : i32, i32
  }
}

</mosaic_0001>

<bundles_post_ra>
// kernel: linear_qnet_forward.1
= control target key start
LH: loop header
LB: loop body
LE: loop exit
PB: predicated region body
PF: predicated region fallthrough
CT: control target
= control target key end

     0   :  { %8 = vsyncpa [#allocation3], 0  ;;  %v722_v30 = vmov 1983009808   ;;  %v173_v32 = vlaneseq  ;;  %s1170_s0 = inlined_call_operand.vmem [shape: f32[2,1024], index: 0, kind: input, shape index: {}]   ;;  %s1171_s1 = inlined_call_operand.vmem [shape: f32[1024,128], index: 1, kind: input, shape index: {}]   ;;  %s1172_s2 = inlined_call_operand.vmem [shape: f32[1,128], index: 2, kind: input, shape index: {}]   ;;  %s1173_s3 = inlined_call_operand.hbm [shape: f32[2,128], index: 3, kind: output, shape index: {}]  }
   0x1   :  { %v54_v0 = vld [vmem:[%s1171_s1 + $0xf8] sm:$0xff]  ;;  %v53_v4 = vld [vmem:[%s1171_s1 + $0xf0] sm:$0xff]  ;;  %v52_v8 = vld [vmem:[%s1171_s1 + $0xe8] sm:$0xff]  ;;  %v171_v31 = vunpack.c.l.s4 %v722_v30 }
   0x2   :  { %v86_v1 = vld [vmem:[%s1171_s1 + $0x1f8] sm:$0xff]  ;;  %544 = vmatprep.subr.mxu0 %v54_v0  ;;  %v85_v5 = vld [vmem:[%s1171_s1 + $0x1f0] sm:$0xff]  ;;  %v84_v9 = vld [vmem:[%s1171_s1 + $0x1e8] sm:$0xff]  ;;  %v174_v42 = vshrl.u32 %v173_v32, 7 }
   0x3   :  { %579 = vmatprep.subr.mxu1 %v86_v1  ;;  %v38_v2 = vld [vmem:[%s1171_s1 + $0x78] sm:$0xff]  ;;  %v37_v6 = vld [vmem:[%s1171_s1 + $0x70] sm:$0xff]  ;;  %v36_v10 = vld [vmem:[%s1171_s1 + $0x68] sm:$0xff]  ;;  %v172_v41 = vunpack.c.0.s8 %v171_v31 }
   0x4   :  { %v70_v3 = vld [vmem:[%s1171_s1 + $0x178] sm:$0xff]  ;;  %545 = vmatpush3.msra.mxu0 %v38_v2  ;;  %v69_v7 = vld [vmem:[%s1171_s1 + $0x170] sm:$0xff]  ;;  %v68_v11 = vld [vmem:[%s1171_s1 + $0x168] sm:$0xff] }
   0x5   :  { %580 = vmatpush3.msra.mxu1 %v70_v3  ;;  %546 = vmatprep.subr.mxu0 %v53_v4  ;;  %v51_v12 = vld [vmem:[%s1171_s1 + $0xe0] sm:$0xff]  ;;  %v50_v16 = vld [vmem:[%s1171_s1 + $0xd8] sm:$0xff]  ;;  %v49_v20 = vld [vmem:[%s1171_s1 + $0xd0] sm:$0xff]  ;;  %v896_v55 = vsub.s32 %v172_v41, %v174_v42 }
   0x6   :  { %581 = vmatprep.subr.mxu1 %v85_v5  ;;  %547 = vmatpush3.msra.mxu0 %v37_v6  ;;  %v83_v13 = vld [vmem:[%s1171_s1 + $0x1e0] sm:$0xff]  ;;  %v82_v17 = vld [vmem:[%s1171_s1 + $0x1d8] sm:$0xff]  ;;  %v81_v21 = vld [vmem:[%s1171_s1 + $0x1d0] sm:$0xff] }
   0x7   :  { %582 = vmatpush3.msra.mxu1 %v69_v7  ;;  %548 = vmatprep.subr.mxu0 %v52_v8  ;;  %v35_v14 = vld [vmem:[%s1171_s1 + $0x60] sm:$0xff]  ;;  %v34_v18 = vld [vmem:[%s1171_s1 + $0x58] sm:$0xff]  ;;  %v33_v22 = vld [vmem:[%s1171_s1 + $0x50] sm:$0xff] }
   0x8   :  { %583 = vmatprep.subr.mxu1 %v84_v9  ;;  %v67_v15 = vld [vmem:[%s1171_s1 + $0x160] sm:$0xff]  ;;  %549 = vmatpush3.msra.mxu0 %v36_v10  ;;  %v66_v19 = vld [vmem:[%s1171_s1 + $0x158] sm:$0xff]  ;;  %v65_v23 = vld [vmem:[%s1171_s1 + $0x150] sm:$0xff] }
   0x9   :  { %584 = vmatpush3.msra.mxu1 %v68_v11  ;;  %550 = vmatprep.subr.mxu0 %v51_v12  ;;  %v48_v24 = vld [vmem:[%s1171_s1 + $0xc8] sm:$0xff]  ;;  %v47_v28 = vld [vmem:[%s1171_s1 + $0xc0] sm:$0xff]  ;;  %v46_v35 = vld [vmem:[%s1171_s1 + $0xb8] sm:$0xff] }
   0xa   :  { %585 = vmatprep.subr.mxu1 %v83_v13  ;;  %551 = vmatpush3.msra.mxu0 %v35_v14  ;;  %v80_v25 = vld [vmem:[%s1171_s1 + $0x1c8] sm:$0xff]  ;;  %v79_v29 = vld [vmem:[%s1171_s1 + $0x1c0] sm:$0xff]  ;;  %v78_v36 = vld [vmem:[%s1171_s1 + $0x1b8] sm:$0xff] }
   0xb   :  { %586 = vmatpush3.msra.mxu1 %v67_v15  ;;  %552 = vmatprep.subr.mxu0 %v50_v16  ;;  %v32_v26 = vld [vmem:[%s1171_s1 + $0x48] sm:$0xff]  ;;  %v31_v33 = vld [vmem:[%s1171_s1 + $0x40] sm:$0xff]  ;;  %v30_v37 = vld [vmem:[%s1171_s1 + $0x38] sm:$0xff] }
   0xc   :  { %587 = vmatprep.subr.mxu1 %v82_v17  ;;  %553 = vmatpush3.msra.mxu0 %v34_v18  ;;  %v64_v27 = vld [vmem:[%s1171_s1 + $0x148] sm:$0xff]  ;;  %v63_v34 = vld [vmem:[%s1171_s1 + $0x140] sm:$0xff]  ;;  %v62_v38 = vld [vmem:[%s1171_s1 + $0x138] sm:$0xff] }
   0xd   :  { %588 = vmatpush3.msra.mxu1 %v66_v19  ;;  %554 = vmatprep.subr.mxu0 %v49_v20  ;;  %v45_v39 = vld [vmem:[%s1171_s1 + $0xb0] sm:$0xff]  ;;  %v44_v45 = vld [vmem:[%s1171_s1 + $0xa8] sm:$0xff]  ;;  %v43_v49 = vld [vmem:[%s1171_s1 + $0xa0] sm:$0xff] }
   0xe   :  { %589 = vmatprep.subr.mxu1 %v81_v21  ;;  %555 = vmatpush3.msra.mxu0 %v33_v22  ;;  %v77_v40 = vld [vmem:[%s1171_s1 + $0x1b0] sm:$0xff]  ;;  %v76_v46 = vld [vmem:[%s1171_s1 + $0x1a8] sm:$0xff]  ;;  %v75_v50 = vld [vmem:[%s1171_s1 + $0x1a0] sm:$0xff] }
   0xf   :  { %590 = vmatpush3.msra.mxu1 %v65_v23  ;;  %556 = vmatprep.subr.mxu0 %v48_v24  ;;  %v29_v43 = vld [vmem:[%s1171_s1 + $0x30] sm:$0xff]  ;;  %v28_v47 = vld [vmem:[%s1171_s1 + $0x28] sm:$0xff]  ;;  %v27_v51 = vld [vmem:[%s1171_s1 + $0x20] sm:$0xff] }
  0x10   :  { %591 = vmatprep.subr.mxu1 %v80_v25  ;;  %557 = vmatpush3.msra.mxu0 %v32_v26  ;;  %v61_v44 = vld [vmem:[%s1171_s1 + $0x130] sm:$0xff]  ;;  %v60_v48 = vld [vmem:[%s1171_s1 + $0x128] sm:$0xff]  ;;  %v59_v52 = vld [vmem:[%s1171_s1 + $0x120] sm:$0xff] }
  0x11   :  { %592 = vmatpush3.msra.mxu1 %v64_v27  ;;  %558 = vmatprep.subr.mxu0 %v47_v28  ;;  %v42_v53 = vld [vmem:[%s1171_s1 + $0x98] sm:$0xff]  ;;  %v688_v57 = vld [vmem:[%s1170_s0] ss:$16 sps:$4 sm:$0xff]   ;;  %v692_v60 = vld [vmem:[%s1170_s0 + $0x4] ss:$16 sps:$4 sm:$0xff]  }
  0x12   :  { %593 = vmatprep.subr.mxu1 %v79_v29  ;;  %559 = vmatpush3.msra.mxu0 %v31_v33  ;;  %v74_v54 = vld [vmem:[%s1171_s1 + $0x198] sm:$0xff]  ;;  %v690_v59 = vld [vmem:[%s1170_s0 + $0x20] ss:$16 sps:$4 sm:$0xff]   ;;  %v176_v63 = vrot.slane %v688_v57, %v896_v55  ;;  %v693_v0 = vld [vmem:[%s1170_s0 + $0x24] ss:$16 sps:$4 sm:$0xff]   ;;  %v183_v6 = vrot.slane %v692_v60, %v896_v55 }
  0x13   :  { %594 = vmatpush3.msra.mxu1 %v63_v34  ;;  %560 = vmatprep.subr.mxu0 %v46_v35  ;;  %v26_v56 = vld [vmem:[%s1171_s1 + $0x18] sm:$0xff]  ;;  %v41_v61 = vld [vmem:[%s1171_s1 + $0x90] sm:$0xff]  ;;  %v190_v3 = vrot.slane %v690_v59, %v896_v55  ;;  %v40_v4 = vld [vmem:[%s1171_s1 + $0x88] sm:$0xff]  ;;  %v197_v7 = vrot.slane %v693_v0, %v896_v55 }
  0x14   :  { %595 = vmatprep.subr.mxu1 %v78_v36  ;;  %561 = vmatpush3.msra.mxu0 %v30_v37  ;;  %v58_v58 = vld [vmem:[%s1171_s1 + $0x118] sm:$0xff]  ;;  %v73_v62 = vld [vmem:[%s1171_s1 + $0x190] sm:$0xff]  ;;  %v72_v5 = vld [vmem:[%s1171_s1 + $0x188] sm:$0xff] }
  0x15   :  { %596 = vmatpush3.msra.mxu1 %v62_v38  ;;  %562 = vmatprep.subr.mxu0 %v45_v39  ;;  %v25_v1 = vld [vmem:[%s1171_s1 + $0x10] sm:$0xff]  ;;  %v24_v8 = vld [vmem:[%s1171_s1 + $0x8] sm:$0xff]  ;;  %v39_v10 = vld [vmem:[%s1171_s1 + $0x80] sm:$0xff]  ;;  %v199_v12 = vcombine.high %v176_v63, %v190_v3  ;;  %v198_v14 = vcombine.low %v176_v63, %v190_v3  ;;  %v201_v16 = vcombine.high %v183_v6, %v197_v7 }
  0x16   :  { %597 = vmatprep.subr.mxu1 %v77_v40  ;;  %563 = vmatpush3.msra.mxu0 %v29_v43  ;;  %v57_v2 = vld [vmem:[%s1171_s1 + $0x110] sm:$0xff]  ;;  %v56_v9 = vld [vmem:[%s1171_s1 + $0x108] sm:$0xff]  ;;  %v71_v11 = vld [vmem:[%s1171_s1 + $0x180] sm:$0xff]  ;;  %v200_v18 = vcombine.low %v183_v6, %v197_v7 }
  0x17   :  { %598 = vmatpush3.msra.mxu1 %v61_v44  ;;  %564 = vmatprep.subr.mxu0 %v44_v45  ;;  %v23_v13 = vld [vmem:[%s1171_s1] sm:$0xff]  ;;  %v118_v17 = vld [vmem:[%s1171_s1 + $0x2f8] sm:$0xff]  ;;  %v117_v22 = vld [vmem:[%s1171_s1 + $0x2f0] sm:$0xff] }
  0x18   :  { %599 = vmatprep.subr.mxu1 %v76_v46  ;;  %565 = vmatpush3.msra.mxu0 %v28_v47  ;;  %v55_v15 = vld [vmem:[%s1171_s1 + $0x100] sm:$0xff]  ;;  %v150_v19 = vld [vmem:[%s1171_s1 + $0x3f8] sm:$0xff]  ;;  %v149_v23 = vld [vmem:[%s1171_s1 + $0x3f0] sm:$0xff] }
  0x19   :  { %600 = vmatpush3.msra.mxu1 %v60_v48  ;;  %566 = vmatprep.subr.mxu0 %v43_v49  ;;  %v102_v20 = vld [vmem:[%s1171_s1 + $0x278] sm:$0xff]  ;;  %v101_v24 = vld [vmem:[%s1171_s1 + $0x270] sm:$0xff]  ;;  %v116_v26 = vld [vmem:[%s1171_s1 + $0x2e8] sm:$0xff] }
  0x1a   :  { %601 = vmatprep.subr.mxu1 %v75_v50  ;;  %567 = vmatpush3.msra.mxu0 %v27_v51  ;;  %v134_v21 = vld [vmem:[%s1171_s1 + $0x378] sm:$0xff]  ;;  %v133_v25 = vld [vmem:[%s1171_s1 + $0x370] sm:$0xff]  ;;  %v148_v27 = vld [vmem:[%s1171_s1 + $0x3e8] sm:$0xff] }
  0x1b   :  { %602 = vmatpush3.msra.mxu1 %v59_v52  ;;  %568 = vmatprep.subr.mxu0 %v42_v53  ;;  %v100_v28 = vld [vmem:[%s1171_s1 + $0x268] sm:$0xff]  ;;  %v115_v30 = vld [vmem:[%s1171_s1 + $0x2e0] sm:$0xff]  ;;  %v114_v34 = vld [vmem:[%s1171_s1 + $0x2d8] sm:$0xff] }
  0x1c   :  { %603 = vmatprep.subr.mxu1 %v74_v54  ;;  %569 = vmatpush3.msra.mxu0 %v26_v56  ;;  %v132_v29 = vld [vmem:[%s1171_s1 + $0x368] sm:$0xff]  ;;  %v147_v31 = vld [vmem:[%s1171_s1 + $0x3e0] sm:$0xff]  ;;  %v146_v35 = vld [vmem:[%s1171_s1 + $0x3d8] sm:$0xff] }
  0x1d   :  { %604 = vmatpush3.msra.mxu1 %v58_v58  ;;  %570 = vmatprep.subr.mxu0 %v41_v61  ;;  %v99_v32 = vld [vmem:[%s1171_s1 + $0x260] sm:$0xff]  ;;  %v98_v36 = vld [vmem:[%s1171_s1 + $0x258] sm:$0xff]  ;;  %v113_v38 = vld [vmem:[%s1171_s1 + $0x2d0] sm:$0xff] }
  0x1e   :  { %605 = vmatprep.subr.mxu1 %v73_v62  ;;  %571 = vmatpush3.msra.mxu0 %v25_v1  ;;  %v131_v33 = vld [vmem:[%s1171_s1 + $0x360] sm:$0xff]  ;;  %v130_v37 = vld [vmem:[%s1171_s1 + $0x358] sm:$0xff]  ;;  %v145_v39 = vld [vmem:[%s1171_s1 + $0x3d0] sm:$0xff] }
  0x1f   :  { %606 = vmatpush3.msra.mxu1 %v57_v2  ;;  %572 = vmatprep.subr.mxu0 %v40_v4  ;;  %v97_v40 = vld [vmem:[%s1171_s1 + $0x250] sm:$0xff]  ;;  %v112_v42 = vld [vmem:[%s1171_s1 + $0x2c8] sm:$0xff]  ;;  %v111_v46 = vld [vmem:[%s1171_s1 + $0x2c0] sm:$0xff] }
  0x20   :  { %607 = vmatprep.subr.mxu1 %v72_v5  ;;  %573 = vmatpush3.msra.mxu0 %v24_v8  ;;  %v129_v41 = vld [vmem:[%s1171_s1 + $0x350] sm:$0xff]  ;;  %v144_v43 = vld [vmem:[%s1171_s1 + $0x3c8] sm:$0xff]  ;;  %v143_v47 = vld [vmem:[%s1171_s1 + $0x3c0] sm:$0xff] }
  0x21   :  { %608 = vmatpush3.msra.mxu1 %v56_v9  ;;  %574 = vmatprep.subr.mxu0 %v39_v10  ;;  %v96_v44 = vld [vmem:[%s1171_s1 + $0x248] sm:$0xff]  ;;  %v95_v48 = vld [vmem:[%s1171_s1 + $0x240] sm:$0xff]  ;;  %v110_v50 = vld [vmem:[%s1171_s1 + $0x2b8] sm:$0xff] }
  0x22   :  { %609 = vmatprep.subr.mxu1 %v71_v11  ;;  %575 = vmatpush3.msra.mxu0 %v23_v13  ;;  %v128_v45 = vld [vmem:[%s1171_s1 + $0x348] sm:$0xff]  ;;  %v127_v49 = vld [vmem:[%s1171_s1 + $0x340] sm:$0xff]  ;;  %v142_v51 = vld [vmem:[%s1171_s1 + $0x3b8] sm:$0xff] }
  0x23   :  { %310 = vmatprep.mubr.f32.mxu0 %v199_v12  ;;  %610 = vmatpush3.msra.mxu1 %v55_v15  ;;  %v94_v52 = vld [vmem:[%s1171_s1 + $0x238] sm:$0xff]  ;;  %v109_v54 = vld [vmem:[%s1171_s1 + $0x2b0] sm:$0xff]  ;;  %v108_v59 = vld [vmem:[%s1171_s1 + $0x2a8] sm:$0xff] }
  0x24   :  { %311 = vmatmul.mubr.f32.vlgmr.msra.gmra.mxu0 %v198_v14  ;;  %380 = vmatprep.mubr.f32.mxu1 %v201_v16  ;;  %v126_v53 = vld [vmem:[%s1171_s1 + $0x338] sm:$0xff]  ;;  %v141_v56 = vld [vmem:[%s1171_s1 + $0x3b0] sm:$0xff]  ;;  %v140_v60 = vld [vmem:[%s1171_s1 + $0x3a8] sm:$0xff] }
  0x25   :  { %614 = vmatprep.subr.mxu0 %v118_v17  ;;  %649 = vmatprep.subr.mxu1 %v150_v19  ;;  %v93_v57 = vld [vmem:[%s1171_s1 + $0x230] sm:$0xff]  ;;  %v92_v61 = vld [vmem:[%s1171_s1 + $0x228] sm:$0xff]  ;;  %v107_v63 = vld [vmem:[%s1171_s1 + $0x2a0] sm:$0xff] }
  0x26   :  { %381 = vmatmul.mubr.f32.vlgmr.msra.gmra.mxu1 %v200_v18  ;;  %615 = vmatpush3.msra.mxu0 %v102_v20  ;;  %v125_v58 = vld [vmem:[%s1171_s1 + $0x330] sm:$0xff]  ;;  %v124_v62 = vld [vmem:[%s1171_s1 + $0x328] sm:$0xff]  ;;  %v139_v0 = vld [vmem:[%s1171_s1 + $0x3a0] sm:$0xff] }
  0x27   :  { %650 = vmatpush3.msra.mxu1 %v134_v21  ;;  %616 = vmatprep.subr.mxu0 %v117_v22  ;;  %v91_v1 = vld [vmem:[%s1171_s1 + $0x220] sm:$0xff]  ;;  %v694_v2 = vld [vmem:[%s1170_s0 + $0x8] ss:$16 sps:$4 sm:$0xff]   ;;  %v698_v5 = vld [vmem:[%s1170_s0 + $0xc] ss:$16 sps:$4 sm:$0xff]  }
  0x28   :  { %651 = vmatprep.subr.mxu1 %v149_v23  ;;  %617 = vmatpush3.msra.mxu0 %v101_v24  ;;  %v696_v3 = vld [vmem:[%s1170_s0 + $0x28] ss:$16 sps:$4 sm:$0xff]   ;;  %v123_v4 = vld [vmem:[%s1171_s1 + $0x320] sm:$0xff]  ;;  %v699_v6 = vld [vmem:[%s1170_s0 + $0x2c] ss:$16 sps:$4 sm:$0xff]   ;;  %v212_v13 = vrot.slane %v694_v2, %v896_v55  ;;  %v219_v17 = vrot.slane %v698_v5, %v896_v55 }
  0x29   :  { %652 = vmatpush3.msra.mxu1 %v133_v25  ;;  %618 = vmatprep.subr.mxu0 %v116_v26  ;;  %v106_v7 = vld [vmem:[%s1171_s1 + $0x298] sm:$0xff]  ;;  %v105_v11 = vld [vmem:[%s1171_s1 + $0x290] sm:$0xff]  ;;  %v226_v14 = vrot.slane %v696_v3, %v896_v55  ;;  %v233_v18 = vrot.slane %v699_v6, %v896_v55  ;;  %v104_v19 = vld [vmem:[%s1171_s1 + $0x288] sm:$0xff] }
  0x2a   :  { %653 = vmatprep.subr.mxu1 %v148_v27  ;;  %619 = vmatpush3.msra.mxu0 %v100_v28  ;;  %v138_v8 = vld [vmem:[%s1171_s1 + $0x398] sm:$0xff]  ;;  %v137_v12 = vld [vmem:[%s1171_s1 + $0x390] sm:$0xff]  ;;  %v136_v20 = vld [vmem:[%s1171_s1 + $0x388] sm:$0xff] }
  0x2b   :  { %654 = vmatpush3.msra.mxu1 %v132_v29  ;;  %620 = vmatprep.subr.mxu0 %v115_v30  ;;  %v90_v9 = vld [vmem:[%s1171_s1 + $0x218] sm:$0xff]  ;;  %v89_v15 = vld [vmem:[%s1171_s1 + $0x210] sm:$0xff]  ;;  %v88_v21 = vld [vmem:[%s1171_s1 + $0x208] sm:$0xff]  ;;  %v235_v24 = vcombine.high %v212_v13, %v226_v14  ;;  %v237_v26 = vcombine.high %v219_v17, %v233_v18  ;;  %v234_v28 = vcombine.low %v212_v13, %v226_v14 }
  0x2c   :  { %655 = vmatprep.subr.mxu1 %v147_v31  ;;  %621 = vmatpush3.msra.mxu0 %v99_v32  ;;  %v122_v10 = vld [vmem:[%s1171_s1 + $0x318] sm:$0xff]  ;;  %v121_v16 = vld [vmem:[%s1171_s1 + $0x310] sm:$0xff]  ;;  %v120_v55 = vld [vmem:[%s1171_s1 + $0x308] sm:$0xff]  ;;  %v236_v29 = vcombine.low %v219_v17, %v233_v18 }
  0x2d   :  { %656 = vmatpush3.msra.mxu1 %v131_v33  ;;  %622 = vmatprep.subr.mxu0 %v114_v34  ;;  %v103_v22 = vld [vmem:[%s1171_s1 + $0x280] sm:$0xff] }
  0x2e   :  { %657 = vmatprep.subr.mxu1 %v146_v35  ;;  %623 = vmatpush3.msra.mxu0 %v98_v36  ;;  %v135_v23 = vld [vmem:[%s1171_s1 + $0x380] sm:$0xff] }
  0x2f   :  { %658 = vmatpush3.msra.mxu1 %v130_v37  ;;  %624 = vmatprep.subr.mxu0 %v113_v38  ;;  %v87_v25 = vld [vmem:[%s1171_s1 + $0x200] sm:$0xff] }
  0x30   :  { %659 = vmatprep.subr.mxu1 %v145_v39  ;;  %625 = vmatpush3.msra.mxu0 %v97_v40  ;;  %v119_v27 = vld [vmem:[%s1171_s1 + $0x300] sm:$0xff] }
  0x31   :  { %660 = vmatpush3.msra.mxu1 %v129_v41  ;;  %626 = vmatprep.subr.mxu0 %v112_v42  ;;  %v543_v34 = vld [vmem:[%s1172_s2] ss:$0 sm:$0xff] }
  0x32   :  { %661 = vmatprep.subr.mxu1 %v144_v43  ;;  %627 = vmatpush3.msra.mxu0 %v96_v44 }
  0x33   :  { %662 = vmatpush3.msra.mxu1 %v128_v45  ;;  %628 = vmatprep.subr.mxu0 %v111_v46 }
  0x34   :  { %663 = vmatprep.subr.mxu1 %v143_v47  ;;  %629 = vmatpush3.msra.mxu0 %v95_v48 }
  0x35   :  { %664 = vmatpush3.msra.mxu1 %v127_v49  ;;  %630 = vmatprep.subr.mxu0 %v110_v50 }
  0x36   :  { %665 = vmatprep.subr.mxu1 %v142_v51  ;;  %631 = vmatpush3.msra.mxu0 %v94_v52 }
  0x37   :  { %666 = vmatpush3.msra.mxu1 %v126_v53  ;;  %632 = vmatprep.subr.mxu0 %v109_v54 }
  0x38   :  { %667 = vmatprep.subr.mxu1 %v141_v56  ;;  %633 = vmatpush3.msra.mxu0 %v93_v57 }
  0x39   :  { %668 = vmatpush3.msra.mxu1 %v125_v58  ;;  %634 = vmatprep.subr.mxu0 %v108_v59 }
  0x3a   :  { %669 = vmatprep.subr.mxu1 %v140_v60  ;;  %635 = vmatpush3.msra.mxu0 %v92_v61 }
  0x3b   :  { %670 = vmatpush3.msra.mxu1 %v124_v62  ;;  %636 = vmatprep.subr.mxu0 %v107_v63 }
  0x3c   :  { %671 = vmatprep.subr.mxu1 %v139_v0  ;;  %637 = vmatpush3.msra.mxu0 %v91_v1 }
  0x3d   :  { %672 = vmatpush3.msra.mxu1 %v123_v4  ;;  %638 = vmatprep.subr.mxu0 %v106_v7 }
  0x3e   :  { %673 = vmatprep.subr.mxu1 %v138_v8  ;;  %639 = vmatpush3.msra.mxu0 %v90_v9 }
  0x3f   :  { %674 = vmatpush3.msra.mxu1 %v122_v10  ;;  %640 = vmatprep.subr.mxu0 %v105_v11 }
  0x40   :  { %675 = vmatprep.subr.mxu1 %v137_v12  ;;  %641 = vmatpush3.msra.mxu0 %v89_v15 }
  0x41   :  { %676 = vmatpush3.msra.mxu1 %v121_v16  ;;  %642 = vmatprep.subr.mxu0 %v104_v19 }
  0x42   :  { %677 = vmatprep.subr.mxu1 %v136_v20  ;;  %643 = vmatpush3.msra.mxu0 %v88_v21 }
  0x43   :  { %678 = vmatpush3.msra.mxu1 %v120_v55  ;;  %644 = vmatprep.subr.mxu0 %v103_v22 }
  0x44   :  { %679 = vmatprep.subr.mxu1 %v135_v23  ;;  %645 = vmatpush3.msra.mxu0 %v87_v25 }
  0x45   :  { %450 = vmatprep.mubr.f32.mxu0 %v235_v24  ;;  %680 = vmatpush3.msra.mxu1 %v119_v27 }
  0x46   :  { %520 = vmatprep.mubr.f32.mxu1 %v237_v26  ;;  %451 = vmatmul.mubr.f32.vlgmr.msra.gmra.mxu0 %v234_v28 }
  0x47   :  { %521 = vmatmul.mubr.f32.vlgmr.msra.gmra.mxu1 %v236_v29 }
  0xe4   :  { %v576_v30 = vpop.f32.mrf.mxu0 }
  0xe6   :  { %v611_v31 = vpop.f32.mrf.mxu1  ;;  %v577_v32 = vpop.f32.mrf.mxu0 }
  0xe7   :  { %v578_v33 = vadd.f32 %v577_v32, %v576_v30 }
  0xe8   :  { %v612_v35 = vpop.f32.mrf.mxu1 }
  0xe9   :  { %v313_v36 = vadd.f32 %v578_v33, %v543_v34  ;;  %v613_v37 = vadd.f32 %v612_v35, %v611_v31 }
  0xeb   :  { %v383_v42 = vadd.f32 %v613_v37, %v313_v36 }
 0x106   :  { %v646_v38 = vpop.f32.mrf.mxu0 }
 0x107   :  { %v681_v39 = vpop.f32.mrf.mxu1 }
 0x108   :  { %v647_v40 = vpop.f32.mrf.mxu0 }
 0x109   :  { %v682_v41 = vpop.f32.mrf.mxu1  ;;  %v648_v43 = vadd.f32 %v647_v40, %v646_v38 }
 0x10a   :  { %v683_v45 = vadd.f32 %v682_v41, %v681_v39 }
 0x10b   :  { %v453_v44 = vadd.f32 %v648_v43, %v383_v42 }
 0x10d   :  { %v523_v46 = vadd.f32 %v683_v45, %v453_v44 }
 0x10f   :  { %526 = vst [vmem:[#allocation2] sm:$0xff] %v523_v46 }
 0x110   :  { %531 = vsyncadd [#allocation3], 96  ;;  %s723_s1 = smov [#allocation2]  }
 0x111   :  { %s532_s15 = sshll.u32 %s723_s1, 4  ;;  %s533_s15 = int_to_ptr.vmem [resolvable:$true] %s532_s15 }
 0x112   :  { %s700_s16 = scalar_lea.vmem %s533_s15, 32  ;;  %s704_s2 = scalar_lea.vmem %s533_s15, 128 }
 0x113   :  { %p701_p0 = scmp.ne.s32.totalorder %s533_s15, %s700_s16  ;;  %p705_p1 = scmp.lt.s32.totalorder %s533_s15, %s533_s15 }
 0x114   :  { %p706_p2 = scmp.lt.s32.totalorder %s704_s2, %s700_s16 }
 0x116   :  { %p707_p3 = por %p706_p2, %p705_p1 }
 0x118   :  { %p708_p4 = pnand %p707_p3, %p701_p0 }
 0x11a   :  { %711 = shalt.err (!%p708_p4)
}
 0x11b   :  { %s724_s0 = smov 32   ;;  %s725_s17 = smov 2  }
 0x11c   :  { %538 = dma.vmem_to_hbm [thread:$0]  %s533_s15, 32, %s1173_s3, [#allocation3], %s724_s0, %s724_s0, %s725_s17  }
 0x11d   :  { %720 = dma.done.wait [#allocation3], 128  }
 0x11e   :  { %721 = vsyncadd [#allocation3], 4294967168 }
 0x11f   :  { %542 = vsyncpa [#allocation3], 1 }

</bundles_post_ra>
